<compile_context>
chip_gen: v7x
topology: tpu7x:2x2x1
jax: 0.10.0
libtpu: 0.0.40
codegen_flags: <defaults>
</compile_context>

<pallas_src>
import functools

import jax
import jax.numpy as jnp
from jax import lax
from jax.experimental import pallas as pl
from jax.experimental.pallas import tpu as pltpu


def _round_up(x, m):
    return ((x + m - 1) // m) * m


def _cdiv(a, b):
    return -(-a // b)


def _action_value_distri_kernel(x_ref, w1_ref, b1_ref, w2_ref, b2_ref,
                                w3_ref, b3_ref, out_ref,
                                *, min_log_std, max_log_std, inv_denominator):
    # Feature-major everywhere: features on sublanes, batch on lanes.
    x = x_ref[...]                                             # (D, TILE_B)

    # Layer 1: (H1, TILE_B) = W1^T @ [obs|act]  (concat fused via packed input)
    h = lax.dot_general(w1_ref[...], x, (((0,), (0,)), ((), ())),
                        preferred_element_type=jnp.float32)
    h = jnp.maximum(h + b1_ref[...], 0.0)                      # bias (H1,1) -> lanes

    # Layer 2: (H2, TILE_B) = W2^T @ h, ReLU
    h = lax.dot_general(w2_ref[...], h, (((0,), (0,)), ((), ())),
                        preferred_element_type=jnp.float32)
    h = jnp.maximum(h + b2_ref[...], 0.0)

    # Output layer: (2, TILE_B); row 0 = value_mean, row 1 = log_std.
    logits = lax.dot_general(w3_ref[...], h, (((0,), (0,)), ((), ())),
                             preferred_element_type=jnp.float32) + b3_ref[...]

    # tanh/clamp epilogue on both rows (2-sublane EUP work, negligible), then a
    # row-select so the whole (2, TILE_B) block is written with ONE store.
    z = jnp.tanh(logits * inv_denominator)
    value_log_std = (jnp.maximum(max_log_std * z, 0.0) +
                     jnp.minimum(-min_log_std * z, 0.0))
    row = lax.broadcasted_iota(jnp.int32, logits.shape, 0)
    out_ref[...] = jnp.where(row == 0, logits, value_log_std).astype(out_ref.dtype)


def action_value_distri_forward(obs, act, params, *, min_log_std, max_log_std,
                                tile_b=4096, input_dtype=jnp.float32):
    """All matmuls / ReLU / tanh-clamp run inside the Pallas kernel; the
    wrapper only packs [obs|act] feature-major (one fused copy), re-lays-out
    the tiny parameters, and transposes the (2, batch) result back."""
    w1, b1, w2, b2, w3, b3 = params
    batch, obs_dim = obs.shape
    act_dim = act.shape[1]
    in_dim = obs_dim + act_dim
    h1 = w1.shape[1]
    h2 = w2.shape[1]

    # Lane-dense packed input stream: (in_dim, batch), batch on the lane axis.
    x = jnp.concatenate([obs, act], axis=-1).astype(input_dtype).T

    # Batch tiling over the lane axis. Small batches: single full-array block
    # (no padding, no (8,128) constraint since block == array). Larger batches:
    # >= 2 roughly-equal multiple-of-128 tiles (v7x megacore), capped at tile_b,
    # padding limited to < 128 zero columns per block.
    tile_cap = max(128, _round_up(int(tile_b), 128))
    if batch <= 256:
        tile, grid, padded = batch, 1, batch
    else:
        nblocks = max(2, _cdiv(batch, tile_cap))
        tile = _round_up(_cdiv(batch, nblocks), 128)
        grid = _cdiv(batch, tile)
        padded = grid * tile
    if padded != batch:
        x = jnp.pad(x, ((0, 0), (0, padded - batch)))

    # Feature-major parameter layout: weights [in, out] contracted on dim 0;
    # biases as (out, 1) columns so they broadcast over lanes.
    w1c = w1.astype(input_dtype)           # only layer 1 touches the input dtype
    b1c = b1.reshape(-1, 1).astype(jnp.float32)
    w2c = w2.astype(jnp.float32)
    b2c = b2.reshape(-1, 1).astype(jnp.float32)
    w3c = w3.astype(jnp.float32)
    b3c = b3.reshape(-1, 1).astype(jnp.float32)

    denominator = max(abs(float(min_log_std)), float(max_log_std))
    if denominator == 0.0:   # reference would NaN here; we return 0 instead
        denominator = 1.0

    kernel = functools.partial(
        _action_value_distri_kernel,
        min_log_std=float(min_log_std),
        max_log_std=float(max_log_std),
        inv_denominator=1.0 / denominator,
    )

    const = lambda i: (0, 0)
    in_bytes = jnp.dtype(input_dtype).itemsize
    cost = pl.CostEstimate(
        flops=2 * padded * (in_dim * h1 + h1 * h2 + h2 * 2),
        transcendentals=2 * padded,
        bytes_accessed=(padded * in_dim * in_bytes + padded * 2 * 4 +
                        (in_dim * h1 + h1 * h2 + h2 * 2 + h1 + h2 + 2) * 4),
    )

    out_t = pl.pallas_call(
        kernel,
        out_shape=jax.ShapeDtypeStruct((2, padded), jnp.float32),
        grid=(grid,),
        in_specs=[
            pl.BlockSpec((in_dim, tile), lambda i: (0, i)),   # streamed, lane-dense
            pl.BlockSpec(w1c.shape, const),                   # VMEM-resident params
            pl.BlockSpec(b1c.shape, const),
            pl.BlockSpec(w2c.shape, const),
            pl.BlockSpec(b2c.shape, const),
            pl.BlockSpec(w3c.shape, const),
            pl.BlockSpec(b3c.shape, const),
        ],
        out_specs=pl.BlockSpec((2, tile), lambda i: (0, i)),  # lane-dense output
        compiler_params=pltpu.CompilerParams(
            dimension_semantics=("parallel",)),
        cost_estimate=cost,
    )(x, w1c, b1c, w2c, b2c, w3c, b3c)

    return out_t[:, :batch].T


def init_params(key, obs_dim, act_dim, hidden_sizes):
    """Deterministic synthetic init (PyTorch-Linear-like uniform ranges).
    Weights stored as [in, out], biases as [1, out]."""
    sizes = [obs_dim + act_dim] + list(hidden_sizes) + [2]
    params = []
    for j in range(len(sizes) - 1):
        fan_in, fan_out = sizes[j], sizes[j + 1]
        key, kw, kb = jax.random.split(key, 3)
        bound = 1.0 / (fan_in ** 0.5)
        w = jax.random.uniform(kw, (fan_in, fan_out), jnp.float32, -bound, bound)
        b = jax.random.uniform(kb, (1, fan_out), jnp.float32, -bound, bound)
        params += [w, b]
    return tuple(params)


def _reference_forward(obs, act, params, *, min_log_std, max_log_std):
    """Pure-JAX reference mirroring the PyTorch module (for verification)."""
    x = jnp.concatenate([obs, act], axis=-1).astype(jnp.float32)
    w1, b1, w2, b2, w3, b3 = params
    h = jnp.maximum(x @ w1 + b1, 0.0)
    h = jnp.maximum(h @ w2 + b2, 0.0)
    logits = h @ w3 + b3
    value_mean, log_std = logits[:, 0:1], logits[:, 1:2]
    denominator = max(abs(min_log_std), max_log_std)
    z = jnp.tanh(log_std / denominator)
    value_log_std = (jnp.maximum(max_log_std * z, 0.0) +
                     jnp.minimum(-min_log_std * z, 0.0))
    return jnp.concatenate([value_mean, value_log_std], axis=-1)


if __name__ == "__main__":
    obs_dim, act_dim = 8, 4
    hidden_sizes = (32, 32)
    min_log_std, max_log_std = -20.0, 2.0

    key = jax.random.PRNGKey(0)
    k_obs, k_act, k_par, k_obs2, k_act2 = jax.random.split(key, 5)
    params = init_params(k_par, obs_dim, act_dim, hidden_sizes)

    # 1) Small batch: single full-array block (grid == 1, no padding).
    batch = 8
    obs = jax.random.normal(k_obs, (batch, obs_dim), jnp.float32)
    act = jax.random.normal(k_act, (batch, act_dim), jnp.float32)
    out = action_value_distri_forward(obs, act, params,
                                      min_log_std=min_log_std,
                                      max_log_std=max_log_std)
    out = jax.block_until_ready(out)
    ref = _reference_forward(obs, act, params,
                             min_log_std=min_log_std, max_log_std=max_log_std)
    assert out.shape == (batch, 2)
    assert jnp.allclose(out, ref, atol=1e-4, rtol=1e-4)

    # 2) Non-multiple batch with small tile: grid == 3 pipelined path + padding.
    batch2 = 300
    obs2 = jax.random.normal(k_obs2, (batch2, obs_dim), jnp.float32)
    act2 = jax.random.normal(k_act2, (batch2, act_dim), jnp.float32)
    out2 = action_value_distri_forward(obs2, act2, params,
                                       min_log_std=min_log_std,
                                       max_log_std=max_log_std,
                                       tile_b=128)
    out2 = jax.block_until_ready(out2)
    ref2 = _reference_forward(obs2, act2, params,
                              min_log_std=min_log_std, max_log_std=max_log_std)
    assert out2.shape == (batch2, 2)
    assert jnp.allclose(out2, ref2, atol=1e-4, rtol=1e-4)

    # 3) Same batch with the default tile: grid == 2 (megacore-friendly split).
    out3 = action_value_distri_forward(obs2, act2, params,
                                       min_log_std=min_log_std,
                                       max_log_std=max_log_std)
    out3 = jax.block_until_ready(out3)
    assert out3.shape == (batch2, 2)
    assert jnp.allclose(out3, ref2, atol=1e-4, rtol=1e-4)

    print("KERNEL_OK")
</pallas_src>

<mosaic_0001>
module attributes {stable_mosaic.version = 11 : i64} {
  func.func @_action_value_distri_kernel(%arg0: i32, %arg1: memref<12x8xf32, #tpu.memory_space<vmem>>, %arg2: memref<12x32xf32, #tpu.memory_space<vmem>>, %arg3: memref<32x1xf32, #tpu.memory_space<vmem>>, %arg4: memref<32x32xf32, #tpu.memory_space<vmem>>, %arg5: memref<32x1xf32, #tpu.memory_space<vmem>>, %arg6: memref<32x2xf32, #tpu.memory_space<vmem>>, %arg7: memref<2x1xf32, #tpu.memory_space<vmem>>, %arg8: memref<2x8xf32, #tpu.memory_space<vmem>>) attributes {dimension_semantics = [#tpu.dimension_semantics<parallel>], iteration_bounds = array<i64: 1>, scalar_prefetch = 0 : i64, scratch_operands = 0 : i64, tpu.core_type = #tpu.core_type<tc>, window_params = [{transform_indices = @transform_0, window_bounds = array<i64: 12, 8>}, {pipeline_mode = #tpu.pipeline_mode<synchronous>, transform_indices = @transform_1, window_bounds = array<i64: 12, 32>}, {pipeline_mode = #tpu.pipeline_mode<synchronous>, transform_indices = @transform_2, window_bounds = array<i64: 32, 1>}, {pipeline_mode = #tpu.pipeline_mode<synchronous>, transform_indices = @transform_3, window_bounds = array<i64: 32, 32>}, {pipeline_mode = #tpu.pipeline_mode<synchronous>, transform_indices = @transform_4, window_bounds = array<i64: 32, 1>}, {pipeline_mode = #tpu.pipeline_mode<synchronous>, transform_indices = @transform_5, window_bounds = array<i64: 32, 2>}, {pipeline_mode = #tpu.pipeline_mode<synchronous>, transform_indices = @transform_6, window_bounds = array<i64: 2, 1>}, {transform_indices = @transform_7, window_bounds = array<i64: 2, 8>}]} {
    %c0 = arith.constant 0 : index
    %c0_0 = arith.constant 0 : index
    %0 = vector.load %arg1[%c0, %c0_0] : memref<12x8xf32, #tpu.memory_space<vmem>>, vector<12x8xf32>
    %c0_1 = arith.constant 0 : index
    %c0_2 = arith.constant 0 : index
    %1 = vector.load %arg2[%c0_1, %c0_2] : memref<12x32xf32, #tpu.memory_space<vmem>>, vector<12x32xf32>
    %cst = arith.constant dense<0.000000e+00> : vector<32x8xf32>
    %2 = tpu.matmul %1, %0, %cst {dimension_numbers = #tpu.dot_dimension_numbers<[0], [0], [1], [1], [0, 1, 1, 1], [], []>} : vector<12x32xf32>, vector<12x8xf32>, vector<32x8xf32> -> vector<32x8xf32>
    %c0_3 = arith.constant 0 : index
    %c0_4 = arith.constant 0 : index
    %3 = vector.load %arg3[%c0_3, %c0_4] : memref<32x1xf32, #tpu.memory_space<vmem>>, vector<32x1xf32>
    %4 = vector.broadcast %3 : vector<32x1xf32> to vector<32x8xf32>
    %5 = arith.addf %2, %4 : vector<32x8xf32>
    %cst_5 = arith.constant 0.000000e+00 : f32
    %6 = vector.broadcast %cst_5 : f32 to vector<32x8xf32>
    %7 = arith.maximumf %5, %6 : vector<32x8xf32>
    %c0_6 = arith.constant 0 : index
    %c0_7 = arith.constant 0 : index
    %8 = vector.load %arg4[%c0_6, %c0_7] : memref<32x32xf32, #tpu.memory_space<vmem>>, vector<32x32xf32>
    %cst_8 = arith.constant dense<0.000000e+00> : vector<32x8xf32>
    %9 = tpu.matmul %8, %7, %cst_8 {dimension_numbers = #tpu.dot_dimension_numbers<[0], [0], [1], [1], [0, 1, 1, 1], [], []>} : vector<32x32xf32>, vector<32x8xf32>, vector<32x8xf32> -> vector<32x8xf32>
    %c0_9 = arith.constant 0 : index
    %c0_10 = arith.constant 0 : index
    %10 = vector.load %arg5[%c0_9, %c0_10] : memref<32x1xf32, #tpu.memory_space<vmem>>, vector<32x1xf32>
    %11 = vector.broadcast %10 : vector<32x1xf32> to vector<32x8xf32>
    %12 = arith.addf %9, %11 : vector<32x8xf32>
    %cst_11 = arith.constant 0.000000e+00 : f32
    %13 = vector.broadcast %cst_11 : f32 to vector<32x8xf32>
    %14 = arith.maximumf %12, %13 : vector<32x8xf32>
    %c0_12 = arith.constant 0 : index
    %c0_13 = arith.constant 0 : index
    %15 = vector.load %arg6[%c0_12, %c0_13] : memref<32x2xf32, #tpu.memory_space<vmem>>, vector<32x2xf32>
    %cst_14 = arith.constant dense<0.000000e+00> : vector<2x8xf32>
    %16 = tpu.matmul %15, %14, %cst_14 {dimension_numbers = #tpu.dot_dimension_numbers<[0], [0], [1], [1], [0, 1, 1, 1], [], []>} : vector<32x2xf32>, vector<32x8xf32>, vector<2x8xf32> -> vector<2x8xf32>
    %c0_15 = arith.constant 0 : index
    %c0_16 = arith.constant 0 : index
    %17 = vector.load %arg7[%c0_15, %c0_16] : memref<2x1xf32, #tpu.memory_space<vmem>>, vector<2x1xf32>
    %18 = vector.broadcast %17 : vector<2x1xf32> to vector<2x8xf32>
    %19 = arith.addf %16, %18 : vector<2x8xf32>
    %cst_17 = arith.constant 5.000000e-02 : f32
    %20 = vector.broadcast %cst_17 : f32 to vector<2x8xf32>
    %21 = arith.mulf %19, %20 : vector<2x8xf32>
    %22 = math.tanh %21 : vector<2x8xf32>
    %cst_18 = arith.constant 2.000000e+00 : f32
    %23 = vector.broadcast %cst_18 : f32 to vector<2x8xf32>
    %24 = arith.mulf %23, %22 : vector<2x8xf32>
    %cst_19 = arith.constant 0.000000e+00 : f32
    %25 = vector.broadcast %cst_19 : f32 to vector<2x8xf32>
    %26 = arith.maximumf %24, %25 : vector<2x8xf32>
    %cst_20 = arith.constant 2.000000e+01 : f32
    %27 = vector.broadcast %cst_20 : f32 to vector<2x8xf32>
    %28 = arith.mulf %27, %22 : vector<2x8xf32>
    %cst_21 = arith.constant 0.000000e+00 : f32
    %29 = vector.broadcast %cst_21 : f32 to vector<2x8xf32>
    %30 = arith.minimumf %28, %29 : vector<2x8xf32>
    %31 = arith.addf %26, %30 : vector<2x8xf32>
    %32 = tpu.iota {dimensions = array<i32: 0>} : vector<2x8xi32>
    %c0_i32 = arith.constant 0 : i32
    %33 = vector.broadcast %c0_i32 : i32 to vector<2x8xi32>
    %34 = arith.cmpi eq, %32, %33 : vector<2x8xi32>
    %35 = arith.select %34, %19, %31 : vector<2x8xi1>, vector<2x8xf32>
    %c0_22 = arith.constant 0 : index
    %c0_23 = arith.constant 0 : index
    %36 = vector.load %arg8[%c0_22, %c0_23] : memref<2x8xf32, #tpu.memory_space<vmem>>, vector<2x8xf32>
    tpu.vector_store %arg8[%c0_22, %c0_23], %35 {strides = array<i32>} : memref<2x8xf32, #tpu.memory_space<vmem>>, vector<2x8xf32>,
    return
  }
  func.func @transform_0(%arg0: i32) -> (i32, i32) {
    %c0_i32 = arith.constant 0 : i32
    %c0_i32_0 = arith.constant 0 : i32
    return %c0_i32, %arg0 : i32, i32
  }
  func.func @transform_1(%arg0: i32) -> (i32, i32) {
    %c0_i32 = arith.constant 0 : i32
    %c0_i32_0 = arith.constant 0 : i32
    %c0_i32_1 = arith.constant 0 : i32
    return %c0_i32, %c0_i32_0 : i32, i32
  }
  func.func @transform_2(%arg0: i32) -> (i32, i32) {
    %c0_i32 = arith.constant 0 : i32
    %c0_i32_0 = arith.constant 0 : i32
    %c0_i32_1 = arith.constant 0 : i32
    return %c0_i32, %c0_i32_0 : i32, i32
  }
  func.func @transform_3(%arg0: i32) -> (i32, i32) {
    %c0_i32 = arith.constant 0 : i32
    %c0_i32_0 = arith.constant 0 : i32
    %c0_i32_1 = arith.constant 0 : i32
    return %c0_i32, %c0_i32_0 : i32, i32
  }
  func.func @transform_4(%arg0: i32) -> (i32, i32) {
    %c0_i32 = arith.constant 0 : i32
    %c0_i32_0 = arith.constant 0 : i32
    %c0_i32_1 = arith.constant 0 : i32
    return %c0_i32, %c0_i32_0 : i32, i32
  }
  func.func @transform_5(%arg0: i32) -> (i32, i32) {
    %c0_i32 = arith.constant 0 : i32
    %c0_i32_0 = arith.constant 0 : i32
    %c0_i32_1 = arith.constant 0 : i32
    return %c0_i32, %c0_i32_0 : i32, i32
  }
  func.func @transform_6(%arg0: i32) -> (i32, i32) {
    %c0_i32 = arith.constant 0 : i32
    %c0_i32_0 = arith.constant 0 : i32
    %c0_i32_1 = arith.constant 0 : i32
    return %c0_i32, %c0_i32_0 : i32, i32
  }
  func.func @transform_7(%arg0: i32) -> (i32, i32) {
    %c0_i32 = arith.constant 0 : i32
    %c0_i32_0 = arith.constant 0 : i32
    return %c0_i32, %arg0 : i32, i32
  }
}

</mosaic_0001>

<bundles_post_ra>
// kernel: tpu_custom_call.1
= control target key start
LH: loop header
LB: loop body
LE: loop exit
PB: predicated region body
PF: predicated region fallthrough
CT: control target
= control target key end

     0   :  { %vm100_vm0 = vcmask 1043456   ;;  %v615_v2 = vmov 0   ;;  %vm616_vm1 = vmmov 1   ;;  %s741_s0 = inlined_call_operand.vmem [shape: f32[12,8], index: 0, kind: input, shape index: {}]   ;;  %s742_s1 = inlined_call_operand.vmem [shape: f32[12,32], index: 1, kind: input, shape index: {}]   ;;  %s743_s2 = inlined_call_operand.vmem [shape: f32[32,1], index: 2, kind: input, shape index: {}]   ;;  %s744_s3 = inlined_call_operand.vmem [shape: f32[32,32], index: 3, kind: input, shape index: {}]   ;;  %s745_s4 = inlined_call_operand.vmem [shape: f32[32,1], index: 4, kind: input, shape index: {}]   ;;  %s746_s5 = inlined_call_operand.vmem [shape: f32[32,2], index: 5, kind: input, shape index: {}]   ;;  %s747_s6 = inlined_call_operand.vmem [shape: f32[2,1], index: 6, kind: input, shape index: {}]   ;;  %s748_s7 = inlined_call_operand.hbm [shape: f32[2,8], index: 7, kind: output, shape index: {}]  }
   0x1   :  { %v29_v0 = vld [vmem:[%s742_s1] sm:$0xff]  ;;  %587 = vset.pattern.permute.xlu1 %v615_v2  ;;  %v30_v4 = vld [vmem:[%s742_s1 + $0x8] sm:$0xf]  ;;  %vm562_vm2 = vmpackc.low %vm100_vm0, %vm616_vm1 }
   0x2   :  { %v31_v1 = vld [vmem:[%s743_s2] sm:$0xff]  ;;  %55 = vxpose.xlu0.b32.start [1/2] (short) (narrow) %v29_v0, 32  ;;  %v28_v5 = vld [vmem:[%s741_s0 + $0x8] sm:$0xf] }
   0x3   :  { %v27_v3 = vld [vmem:[%s741_s0] sm:$0xff]  ;;  %37 = vperm.xlu1 %587, %v31_v1   ;;  %v32_v6 = vld [vmem:[%s743_s2 + $0x8] sm:$0xff] }
   0x4   :  { %v561_v7 = vpack.c.bf16 %v28_v5, %v27_v3 }
   0x5   :  { %12 = vsyncpa [#allocation3], 0  ;;  %v34_v8 = vld [vmem:[%s743_s2 + $0x18] sm:$0xff]  ;;  %v193_v9 = vld [vmem:[%s744_s3] sm:$0xff]  ;;  %vm87_vm3 = vcmask 97280   ;;  %vm253_vm4 = vcmask 261120  }
   0x6   :  { %56 = vxpose.xlu0.b32.end [2/2] (short) (narrow) %v30_v4, 32  ;;  %563 = vmatprep.subr.msk.bf16.mxu0 %vm562_vm2, %v561_v7  ;;  %v33_v10 = vld [vmem:[%s743_s2 + $0x10] sm:$0xff]  ;;  %v194_v11 = vld [vmem:[%s744_s3 + $0x8] sm:$0xff]  ;;  %v197_v12 = vld [vmem:[%s745_s4] sm:$0xff]  ;;  %v617_v49 = vmov 0.0|0.0   ;;  %vm618_vm5 = vmmov 0  }
   0x7   :  { %42 = vperm.xlu1 %587, %v32_v6   ;;  %566 = vmatpush3.bf16.msk.msra.mxu0 %vm562_vm2, %v561_v7  ;;  %v195_v13 = vld [vmem:[%s744_s3 + $0x10] sm:$0xff]  ;;  %v198_v14 = vld [vmem:[%s745_s4 + $0x8] sm:$0xff]  ;;  %v196_v15 = vld [vmem:[%s744_s3 + $0x18] sm:$0xff]  ;;  %v619_v50 = vmov 0.0   ;;  %vm481_vm7 = vcmask 58368  }
   0x8   :  { %v199_v16 = vld [vmem:[%s745_s4 + $0x10] sm:$0xff]  ;;  %v200_v17 = vld [vmem:[%s745_s4 + $0x18] sm:$0xff]  ;;  %v359_v18 = vld [vmem:[%s747_s6] sm:$0x3]  ;;  %575 = vmatprep.subr.bf16.mxu0 %v617_v49 }
   0x9   :  { %v355_v27 = vld [vmem:[%s746_s5] sm:$0xff]  ;;  %v356_v28 = vld [vmem:[%s746_s5 + $0x8] sm:$0xff]  ;;  %v357_v29 = vld [vmem:[%s746_s5 + $0x10] sm:$0xff] }
   0xa   :  { %v358_v30 = vld [vmem:[%s746_s5 + $0x18] sm:$0xff]  ;;  %s620_s5 = smov [#allocation2]  }
   0xb   :  { %52 = vperm.xlu1 %587, %v34_v8   ;;  %s489_s14 = sshll.u32 %s620_s5, 4  ;;  %s490_s14 = int_to_ptr.vmem [resolvable:$true] %s489_s14 }
   0xc   :  { %s591_s1 = scalar_lea.vmem %s490_s14, 32  ;;  %p596_p1 = scmp.lt.s32.totalorder %s490_s14, %s490_s14 }
   0xd   :  { %p592_p0 = scmp.ne.s32.totalorder %s490_s14, %s591_s1  ;;  %p597_p2 = scmp.lt.s32.totalorder %s591_s1, %s591_s1 }
   0xf   :  { %p598_p3 = por %p597_p2, %p596_p1 }
  0x11   :  { %p599_p4 = pnand %p598_p3, %p592_p0 }
  0x2f   :  { %588 = vset.pattern.permute.xlu0 %v615_v2 }
  0x34   :  { %221 = vxpose.xlu1.b32.start [1/4] (short) (narrow) %v193_v9, 32 }
  0x37   :  { %47 = vperm.xlu0 %588, %v33_v10  }
  0x38   :  { %222 = vxpose.xlu1.b32.cont [2/4] (short) (narrow) %v194_v11, 32  ;;  %v477_v11 = vlaneseq }
  0x3b   :  { %203 = vperm.xlu0 %588, %v197_v12  }
  0x3c   :  { %223 = vxpose.xlu1.b32.cont [3/4] (short) (narrow) %v195_v13, 32  ;;  %v478_v13 = vshrl.u32 %v477_v11, 7 }
  0x3e   :  { %vm479_vm6 = vcmp.eq.s32.totalorder %v478_v13, 0 }
  0x3f   :  { %208 = vperm.xlu0 %588, %v198_v14  }
  0x40   :  { %224 = vxpose.xlu1.b32.end [4/4] (short) (narrow) %v196_v15, 32 }
  0x43   :  { %213 = vperm.xlu0 %588, %v199_v16  }
  0x5e   :  { %218 = vperm.xlu1 %587, %v200_v17  }
  0x61   :  { %365 = vxpose.xlu0.b32.start [1/4] (short) (narrow) %v355_v27, 8 }
  0x62   :  { %362 = vperm.xlu1 %587, %v359_v18  }
  0x65   :  { %366 = vxpose.xlu0.b32.cont [2/4] (short) (narrow) %v356_v28, 8 }
  0x69   :  { %367 = vxpose.xlu0.b32.cont [3/4] (short) (narrow) %v357_v29, 8 }
  0x6d   :  { %368 = vxpose.xlu0.b32.end [4/4] (short) (narrow) %v358_v30, 8 }
  0x82   :  { %v71_v19 = vpop.trf.xlu0  ;;  %v38_v23 = vpop.permute.xlu1 %37 }
  0x83   :  { %530 = vmatprep.mubr.msk.f32.mxu0 %vm87_vm3, %v71_v19 }
  0x86   :  { %v72_v20 = vpop.trf.xlu0  ;;  %v43_v24 = vpop.permute.xlu1 %42 }
  0x87   :  { %531 = vmatmul.mubr.msk.f32.vlgmr.msra.gmra.mrb[0].mxu0 %vm87_vm3, %v72_v20 }
  0x8a   :  { %v73_v21 = vpop.trf.xlu0  ;;  %v53_v25 = vpop.permute.xlu1 %52 }
  0x8b   :  { %533 = vmatprep.mubr.msk.f32.mxu0 %vm87_vm3, %v73_v21 }
  0x8e   :  { %v74_v22 = vpop.trf.xlu0 }
  0x8f   :  { %534 = vmatmul.mubr.msk.f32.gmra.mrb[2].mxu0 %vm87_vm3, %v74_v22 }
  0x90   :  { %558 = vmatprep.mubr.msk.f32.mxu0 %vm618_vm5, %v619_v50 }
  0xb4   :  { %v237_v26 = vpop.trf.xlu1 }
  0xb5   :  { %544 = vmatprep.mubr.msk.f32.mxu1 %vm253_vm4, %v237_v26 }
  0xb6   :  { %v48_v39 = vpop.permute.xlu0 %47 }
  0xb8   :  { %v238_v43 = vpop.trf.xlu1 }
  0xba   :  { %v204_v51 = vpop.permute.xlu0 %203 }
  0xbc   :  { %v239_v47 = vpop.trf.xlu1 }
  0xbe   :  { %v209_v52 = vpop.permute.xlu0 %208 }
  0xc0   :  { %v240_v48 = vpop.trf.xlu1 }
  0xc2   :  { %v214_v61 = vpop.permute.xlu0 %213 }
  0xdd   :  { %v219_v58 = vpop.permute.xlu1 %218 }
  0xe1   :  { %v381_v5 = vpop.trf.xlu0  ;;  %v363_v6 = vpop.permute.xlu1 %362 }
 0x15a   :  { %v532_v31 = vpop.f32.mrb[0].mxu0 }
 0x15b   :  { %v176_v32 = vadd.f32 %v532_v31, %v43_v24  ;;  %v170_v33 = vpop.f32.mrb[1].mxu0 }
 0x15c   :  { %v171_v34 = vadd.f32 %v170_v33, %v38_v23 }
 0x15d   :  { %v190_v35 = vmax.f32 %v176_v32, 0.0 }
 0x15e   :  { %v189_v36 = vmax.f32 %v171_v34, 0.0 }
 0x160   :  { %v567_v37 = vpack.c.bf16 %v190_v35, %v189_v36 }
 0x162   :  { %v535_v38 = vpop.f32.mrb[2].mxu0  ;;  %568 = vmatprep.subr.bf16.mxu1 %v567_v37 }
 0x163   :  { %v186_v40 = vadd.f32 %v535_v38, %v53_v25  ;;  %v180_v41 = vpop.f32.mrb[3].mxu0  ;;  %570 = vmatpush3.bf16.msra.mxu1 %v567_v37 }
 0x164   :  { %v181_v42 = vadd.f32 %v180_v41, %v48_v39 }
 0x165   :  { %v192_v44 = vmax.f32 %v186_v40, 0.0 }
 0x166   :  { %v191_v45 = vmax.f32 %v181_v42, 0.0 }
 0x168   :  { %v571_v46 = vpack.c.bf16 %v192_v44, %v191_v45 }
 0x16a   :  { %572 = vmatprep.subr.bf16.mxu1 %v571_v46 }
 0x16b   :  { %574 = vmatpush3.bf16.msra.mxu1 %v571_v46 }
 0x16e   :  { %545 = vmatmul.mubr.msk.f32.vlgmr.msra.gmra.mrb[0].mxu1 %vm253_vm4, %v238_v43 }
 0x16f   :  { %547 = vmatprep.mubr.msk.f32.mxu1 %vm253_vm4, %v239_v47 }
 0x172   :  { %548 = vmatmul.mubr.msk.f32.gmra.mrb[2].mxu1 %vm253_vm4, %v240_v48 }
 0x241   :  { %v546_v53 = vpop.f32.mrb[0].mxu1 }
 0x242   :  { %v338_v54 = vadd.f32 %v546_v53, %v209_v52  ;;  %v332_v55 = vpop.f32.mrb[1].mxu1 }
 0x243   :  { %v333_v56 = vadd.f32 %v332_v55, %v204_v51 }
 0x244   :  { %v352_v57 = vmax.f32 %v338_v54, 0.0 }
 0x245   :  { %v351_v59 = vmax.f32 %v333_v56, 0.0  ;;  %v549_v60 = vpop.f32.mrb[2].mxu1 }
 0x246   :  { %v348_v62 = vadd.f32 %v549_v60, %v219_v58  ;;  %v342_v63 = vpop.f32.mrb[3].mxu1 }
 0x247   :  { %v576_v0 = vpack.c.bf16 %v352_v57, %v351_v59  ;;  %v343_v1 = vadd.f32 %v342_v63, %v214_v61 }
 0x248   :  { %v354_v2 = vmax.f32 %v348_v62, 0.0 }
 0x249   :  { %v353_v3 = vmax.f32 %v343_v1, 0.0  ;;  %577 = vmatpush3.bf16.msra.mxu0 %v576_v0 }
 0x24a   :  { %578 = vmatprep.subr.bf16.mxu0 %v617_v49 }
 0x24b   :  { %v579_v4 = vpack.c.bf16 %v354_v2, %v353_v3 }
 0x24d   :  { %580 = vmatpush3.bf16.msra.mxu0 %v579_v4 }
 0x250   :  { %559 = vmatmul.mubr.msk.f32.vlgmr.msra.gmra.mrb[4].mxu0 %vm253_vm4, %v381_v5 }
 0x323   :  { %v466_v7 = vpop.f32.mrb[4].mxu0 }
 0x324   :  { %v467_v8 = vadd.f32 %v466_v7, %v363_v6  ;;  %v560_v9 = vpop.f32.mrb[5].mxu0 }
 0x326   :  { %v470_v10 = vmul.f32 0.05, %v467_v8 }
 0x328   :  { %589 = vtanh.f32 %v470_v10 }
 0x332   :  { %v590_v12 = vpop.eup %589 }
 0x333   :  { %v472_v14 = vmul.f32 2.0, %v590_v12  ;;  %v474_v15 = vmul.f32 20.0, %v590_v12 }
 0x335   :  { %v473_v16 = vmax.f32 %v472_v14, 0.0  ;;  %v475_v17 = vmin.f32 %v474_v15, 0.0 }
 0x337   :  { %v476_v18 = vadd.f32 %v475_v17, %v473_v16 }
 0x339   :  { %v480_v19 = vsel %vm479_vm6, %v467_v8, %v476_v18 }
 0x33a   :  { %482 = vst.msk [vmem:[#allocation2] sm:$0x3] %vm481_vm7, %v480_v19 }
 0x33b   :  { %602 = shalt.err (!%p599_p4)
}
 0x33c   :  { %s603_s16 = scalar_lea.hbm %s748_s7, 32 }
 0x33d   :  { %p604_p5 = scmp.ne.s32.totalorder %s748_s7, %s603_s16  ;;  %p607_p6 = scmp.lt.u32.totalorder %s603_s16, %s748_s7 }
 0x33f   :  { %p609_p7 = pnand %p607_p6, %p604_p5 }
 0x341   :  { %612 = shalt.err (!%p609_p7)
}
 0x342   :  { %492 = dma.vmem_to_hbm [thread:$0]  %s490_s14, 32, %s748_s7, [#allocation3]  }
 0x343   :  { %613 = dma.done.wait [#allocation3], 32  }
 0x344   :  { %614 = vsyncadd [#allocation3], 4294967264 }
 0x345   :  { %496 = vsyncpa [#allocation3], 1 }

</bundles_post_ra>
